<compile_context>
chip_gen: v7x
topology: tpu7x:2x2x1
jax: 0.10.0
libtpu: 0.0.40
codegen_flags: <defaults>
</compile_context>

<pallas_src>
import functools

import jax
import jax.numpy as jnp
from jax.experimental import pallas as pl
from jax.experimental.pallas import tpu as pltpu


# ----------------------------------------------------------------------------
# helpers
# ----------------------------------------------------------------------------

def _round_up(x, m):
    return ((x + m - 1) // m) * m


def _largest_tile(dim, target, align):
    """Largest tile <= target that divides `dim` and is a multiple of `align`.
    Falls back to the full dim (single block) if no such tile exists."""
    if dim <= target:
        return dim
    t = (target // align) * align
    while t >= align:
        if dim % t == 0:
            return t
        t -= align
    return dim


# ----------------------------------------------------------------------------
# fused BertOutput kernel
# ----------------------------------------------------------------------------

def _bert_output_kernel(x_ref, w_ref, b_ref, r_ref, g_ref, beta_ref, o_ref,
                        *, eps):
    """One (tm, H) output tile; full-K contraction per grid step.

    x_ref   : (tm, I)  producer dtype (cast to bf16 in-kernel for the MXU)
    w_ref   : (I, H)   bf16 pre-transposed weight, VMEM-resident (constant idx)
    b_ref   : (1, H)   f32 dense bias
    r_ref   : (tm, H)  residual (input_tensor), producer dtype
    g_ref   : (1, H)   f32 LayerNorm gamma
    beta_ref: (1, H)   f32 LayerNorm beta
    o_ref   : (tm, H)  output, residual dtype
    """
    # bf16 MXU feed, f32 accumulation.
    x = x_ref[...].astype(jnp.bfloat16)
    h = jnp.dot(x, w_ref[...], preferred_element_type=jnp.float32)

    # dropout = identity (inference); bias + residual + LayerNorm, all in f32.
    h = h + b_ref[...] + r_ref[...].astype(jnp.float32)
    mu = jnp.mean(h, axis=-1, keepdims=True)
    c = h - mu
    var = jnp.mean(c * c, axis=-1, keepdims=True)
    inv = jax.lax.rsqrt(var + eps)                              # EUP
    o_ref[...] = (c * inv * g_ref[...] + beta_ref[...]).astype(o_ref.dtype)


def prepare_bert_output_params(params):
    """One-time (model-load) layout/dtype prep, hoisted out of the jitted
    forward: pre-transpose the PyTorch (out, in) weight to lane-dense (K, N)
    bf16 and reshape the per-feature vectors to (1, H) f32."""
    return {
        "w_kn": jnp.asarray(params["w"]).T.astype(jnp.bfloat16),          # (I, H)
        "b": jnp.asarray(params["b"]).reshape(1, -1).astype(jnp.float32),
        "gamma": jnp.asarray(params["gamma"]).reshape(1, -1).astype(jnp.float32),
        "beta": jnp.asarray(params["beta"]).reshape(1, -1).astype(jnp.float32),
    }


def bert_output_pallas(hidden_states, input_tensor, prepped, eps,
                       *, tm_target=512):
    """BertOutput.forward: LayerNorm(dense(hidden_states) + input_tensor).

    hidden_states: (B, L, intermediate_size)  producer dtype (f32 or bf16)
    input_tensor : (B, L, hidden_size)        producer dtype (f32 or bf16)
    prepped      : output of prepare_bert_output_params (weight already
                   (K, N) bf16 -> no per-call transpose/cast).
    """
    B, L, I = hidden_states.shape
    H = input_tensor.shape[-1]
    M = B * L
    out_dtype = input_tensor.dtype

    w_kn = prepped["w_kn"]
    b, g, beta = prepped["b"], prepped["gamma"], prepped["beta"]

    # Reshapes only (no dtype change, no extra HBM passes in the wrapper).
    x = hidden_states.reshape(M, I)
    r = input_tensor.reshape(M, H)

    # ---- M tiling ------------------------------------------------------------
    # Prefer a tile that divides M exactly (no padding pass).  tm_target=512
    # keeps M/tm even at real BERT shapes (good 2-TC megacore split on v7x).
    tm = _largest_tile(M, tm_target, 8)
    m_pad = M
    if tm == M and M > 4 * tm_target:
        # Pathological M with no aligned divisor: fall back to padding.
        tm = tm_target
        m_pad = _round_up(M, tm)
        x = jnp.pad(x, ((0, m_pad - M), (0, 0)))
        r = jnp.pad(r, ((0, m_pad - M), (0, 0)))

    grid = (m_pad // tm,)

    # ---- VMEM budget: actual double-buffered footprint + headroom ------------
    footprint = (
        2 * tm * I * x.dtype.itemsize            # x tiles (double-buffered)
        + 2 * I * H * 2                          # bf16 weight (constant block)
        + 2 * tm * H * r.dtype.itemsize          # residual tiles
        + 2 * tm * H * jnp.dtype(out_dtype).itemsize  # output tiles
        + 2 * 3 * H * 4                          # bias / gamma / beta
    )
    vmem_limit = min(int(footprint) + (4 << 20), 48 << 20)

    out = pl.pallas_call(
        functools.partial(_bert_output_kernel, eps=eps),
        out_shape=jax.ShapeDtypeStruct((m_pad, H), out_dtype),
        grid=grid,
        in_specs=[
            pl.BlockSpec((tm, I), lambda i: (i, 0)),   # x row tile (full K)
            pl.BlockSpec((I, H), lambda i: (0, 0)),    # W^T, fetched once
            pl.BlockSpec((1, H), lambda i: (0, 0)),    # bias
            pl.BlockSpec((tm, H), lambda i: (i, 0)),   # residual
            pl.BlockSpec((1, H), lambda i: (0, 0)),    # gamma
            pl.BlockSpec((1, H), lambda i: (0, 0)),    # beta
        ],
        out_specs=pl.BlockSpec((tm, H), lambda i: (i, 0)),
        compiler_params=pltpu.CompilerParams(
            dimension_semantics=("parallel",),
            vmem_limit_bytes=vmem_limit),
    )(x, w_kn, b, r, g, beta)

    if m_pad != M:
        out = out[:M]
    return out.reshape(B, L, H)


# ----------------------------------------------------------------------------
# main
# ----------------------------------------------------------------------------

if __name__ == "__main__":
    # Small-but-aligned shapes: hidden=128 keeps the lane dim dense,
    # intermediate=1024 exercises a long-K single-step contraction.
    B, L = 2, 8
    H = 128          # hidden_size
    I = 1024         # intermediate_size
    eps = 1e-12

    key = jax.random.PRNGKey(0)
    k_h, k_r, k_w, k_b, k_g, k_bb = jax.random.split(key, 6)

    hidden_states = jax.random.normal(k_h, (B, L, I), jnp.float32)
    input_tensor = jax.random.normal(k_r, (B, L, H), jnp.float32)

    params = {
        "w": jax.random.normal(k_w, (H, I), jnp.float32) * 0.02,   # PyTorch (out, in)
        "b": jax.random.normal(k_b, (H,), jnp.float32) * 0.02,
        "gamma": 1.0 + 0.1 * jax.random.normal(k_g, (H,), jnp.float32),
        "beta": 0.1 * jax.random.normal(k_bb, (H,), jnp.float32),
    }

    # One-time weight prep (model-load time), OUTSIDE the jitted forward.
    prepped = prepare_bert_output_params(params)

    run = jax.jit(functools.partial(bert_output_pallas, eps=eps))
    out = run(hidden_states, input_tensor, prepped)
    jax.block_until_ready(out)

    # f32 reference (exact PyTorch BertOutput semantics, dropout = identity).
    def ref(hidden, inp, p):
        h = hidden @ p["w"].T + p["b"]
        h = h + inp
        mu = jnp.mean(h, axis=-1, keepdims=True)
        var = jnp.mean((h - mu) ** 2, axis=-1, keepdims=True)
        return (h - mu) * jax.lax.rsqrt(var + eps) * p["gamma"] + p["beta"]

    expected = ref(hidden_states, input_tensor, params)

    assert out.shape == (B, L, H)
    assert bool(jnp.all(jnp.isfinite(out)))
    max_err = float(jnp.max(jnp.abs(out - expected)))
    # bf16 MXU feed with f32 accumulation: expect ~1e-3 abs error at these sizes.
    assert max_err < 5e-2, f"max abs error vs f32 reference too large: {max_err}"
    print("KERNEL_OK")
</pallas_src>

<mosaic_0001>
module attributes {stable_mosaic.version = 11 : i64} {
  func.func @_bert_output_kernel(%arg0: i32, %arg1: memref<16x1024xf32, #tpu.memory_space<vmem>>, %arg2: memref<1024x128xbf16, #tpu.memory_space<vmem>>, %arg3: memref<1x128xf32, #tpu.memory_space<vmem>>, %arg4: memref<16x128xf32, #tpu.memory_space<vmem>>, %arg5: memref<1x128xf32, #tpu.memory_space<vmem>>, %arg6: memref<1x128xf32, #tpu.memory_space<vmem>>, %arg7: memref<16x128xf32, #tpu.memory_space<vmem>>) attributes {dimension_semantics = [#tpu.dimension_semantics<parallel>], iteration_bounds = array<i64: 1>, scalar_prefetch = 0 : i64, scratch_operands = 0 : i64, tpu.core_type = #tpu.core_type<tc>, window_params = [{transform_indices = @transform_0, window_bounds = array<i64: 16, 1024>}, {pipeline_mode = #tpu.pipeline_mode<synchronous>, transform_indices = @transform_1, window_bounds = array<i64: 1024, 128>}, {pipeline_mode = #tpu.pipeline_mode<synchronous>, transform_indices = @transform_2, window_bounds = array<i64: 1, 128>}, {transform_indices = @transform_3, window_bounds = array<i64: 16, 128>}, {pipeline_mode = #tpu.pipeline_mode<synchronous>, transform_indices = @transform_4, window_bounds = array<i64: 1, 128>}, {pipeline_mode = #tpu.pipeline_mode<synchronous>, transform_indices = @transform_5, window_bounds = array<i64: 1, 128>}, {transform_indices = @transform_6, window_bounds = array<i64: 16, 128>}]} {
    %c0 = arith.constant 0 : index
    %c0_0 = arith.constant 0 : index
    %0 = vector.load %arg1[%c0, %c0_0] : memref<16x1024xf32, #tpu.memory_space<vmem>>, vector<16x1024xf32>
    %1 = arith.truncf %0 : vector<16x1024xf32> to vector<16x1024xbf16>
    %c0_1 = arith.constant 0 : index
    %c0_2 = arith.constant 0 : index
    %2 = vector.load %arg2[%c0_1, %c0_2] : memref<1024x128xbf16, #tpu.memory_space<vmem>>, vector<1024x128xbf16>
    %cst = arith.constant dense<0.000000e+00> : vector<16x128xf32>
    %3 = tpu.matmul %1, %2, %cst {dimension_numbers = #tpu.dot_dimension_numbers<[1], [0], [0], [1], [0, 0, 1, 1], [], []>} : vector<16x1024xbf16>, vector<1024x128xbf16>, vector<16x128xf32> -> vector<16x128xf32>
    %c0_3 = arith.constant 0 : index
    %c0_4 = arith.constant 0 : index
    %4 = vector.load %arg3[%c0_3, %c0_4] : memref<1x128xf32, #tpu.memory_space<vmem>>, vector<1x128xf32>
    %5 = vector.broadcast %4 : vector<1x128xf32> to vector<16x128xf32>
    %6 = arith.addf %3, %5 : vector<16x128xf32>
    %c0_5 = arith.constant 0 : index
    %c0_6 = arith.constant 0 : index
    %7 = vector.load %arg4[%c0_5, %c0_6] : memref<16x128xf32, #tpu.memory_space<vmem>>, vector<16x128xf32>
    %8 = arith.addf %6, %7 : vector<16x128xf32>
    %cst_7 = arith.constant dense<0.000000e+00> : vector<16xf32>
    %9 = vector.multi_reduction <add>, %8, %cst_7 [1] : vector<16x128xf32> to vector<16xf32>
    %10 = vector.shape_cast %9 : vector<16xf32> to vector<16x1xf32>
    %cst_8 = arith.constant 1.280000e+02 : f32
    %11 = vector.broadcast %cst_8 : f32 to vector<16x1xf32>
    %12 = arith.divf %10, %11 : vector<16x1xf32>
    %13 = vector.broadcast %12 : vector<16x1xf32> to vector<16x128xf32>
    %14 = arith.subf %8, %13 : vector<16x128xf32>
    %15 = arith.mulf %14, %14 : vector<16x128xf32>
    %cst_9 = arith.constant dense<0.000000e+00> : vector<16xf32>
    %16 = vector.multi_reduction <add>, %15, %cst_9 [1] : vector<16x128xf32> to vector<16xf32>
    %17 = vector.shape_cast %16 : vector<16xf32> to vector<16x1xf32>
    %cst_10 = arith.constant 1.280000e+02 : f32
    %18 = vector.broadcast %cst_10 : f32 to vector<16x1xf32>
    %19 = arith.divf %17, %18 : vector<16x1xf32>
    %cst_11 = arith.constant 9.99999996E-13 : f32
    %20 = vector.broadcast %cst_11 : f32 to vector<16x1xf32>
    %21 = arith.addf %19, %20 : vector<16x1xf32>
    %22 = math.rsqrt %21 : vector<16x1xf32>
    %23 = vector.broadcast %22 : vector<16x1xf32> to vector<16x128xf32>
    %24 = arith.mulf %14, %23 : vector<16x128xf32>
    %c0_12 = arith.constant 0 : index
    %c0_13 = arith.constant 0 : index
    %25 = vector.load %arg5[%c0_12, %c0_13] : memref<1x128xf32, #tpu.memory_space<vmem>>, vector<1x128xf32>
    %26 = vector.broadcast %25 : vector<1x128xf32> to vector<16x128xf32>
    %27 = arith.mulf %24, %26 : vector<16x128xf32>
    %c0_14 = arith.constant 0 : index
    %c0_15 = arith.constant 0 : index
    %28 = vector.load %arg6[%c0_14, %c0_15] : memref<1x128xf32, #tpu.memory_space<vmem>>, vector<1x128xf32>
    %29 = vector.broadcast %28 : vector<1x128xf32> to vector<16x128xf32>
    %30 = arith.addf %27, %29 : vector<16x128xf32>
    %c0_16 = arith.constant 0 : index
    %c0_17 = arith.constant 0 : index
    %31 = vector.load %arg7[%c0_16, %c0_17] : memref<16x128xf32, #tpu.memory_space<vmem>>, vector<16x128xf32>
    tpu.vector_store %arg7[%c0_16, %c0_17], %30 {strides = array<i32>} : memref<16x128xf32, #tpu.memory_space<vmem>>, vector<16x128xf32>,
    return
  }
  func.func @transform_0(%arg0: i32) -> (i32, i32) {
    %c0_i32 = arith.constant 0 : i32
    %c0_i32_0 = arith.constant 0 : i32
    return %arg0, %c0_i32 : i32, i32
  }
  func.func @transform_1(%arg0: i32) -> (i32, i32) {
    %c0_i32 = arith.constant 0 : i32
    %c0_i32_0 = arith.constant 0 : i32
    %c0_i32_1 = arith.constant 0 : i32
    return %c0_i32, %c0_i32_0 : i32, i32
  }
  func.func @transform_2(%arg0: i32) -> (i32, i32) {
    %c0_i32 = arith.constant 0 : i32
    %c0_i32_0 = arith.constant 0 : i32
    %c0_i32_1 = arith.constant 0 : i32
    return %c0_i32, %c0_i32_0 : i32, i32
  }
  func.func @transform_3(%arg0: i32) -> (i32, i32) {
    %c0_i32 = arith.constant 0 : i32
    %c0_i32_0 = arith.constant 0 : i32
    return %arg0, %c0_i32 : i32, i32
  }
  func.func @transform_4(%arg0: i32) -> (i32, i32) {
    %c0_i32 = arith.constant 0 : i32
    %c0_i32_0 = arith.constant 0 : i32
    %c0_i32_1 = arith.constant 0 : i32
    return %c0_i32, %c0_i32_0 : i32, i32
  }
  func.func @transform_5(%arg0: i32) -> (i32, i32) {
    %c0_i32 = arith.constant 0 : i32
    %c0_i32_0 = arith.constant 0 : i32
    %c0_i32_1 = arith.constant 0 : i32
    return %c0_i32, %c0_i32_0 : i32, i32
  }
  func.func @transform_6(%arg0: i32) -> (i32, i32) {
    %c0_i32 = arith.constant 0 : i32
    %c0_i32_0 = arith.constant 0 : i32
    return %arg0, %c0_i32 : i32, i32
  }
}

</mosaic_0001>

<bundles_post_ra>
// kernel: bert_output_pallas.1
= control target key start
LH: loop header
LB: loop body
LE: loop exit
PB: predicated region body
PF: predicated region fallthrough
CT: control target
= control target key end

     0   :  { %11 = vsyncpa [#allocation3], 0  ;;  %s1271_s0 = inlined_call_operand.hbm [shape: f32[16,1024], index: 0, kind: input, shape index: {}]   ;;  %s1272_s1 = inlined_call_operand.hbm [shape: bf16[1024,128], index: 1, kind: input, shape index: {}]   ;;  %s1273_s2 = inlined_call_operand.vmem [shape: f32[1,128], index: 2, kind: input, shape index: {}]   ;;  %s1274_s3 = inlined_call_operand.hbm [shape: f32[16,128], index: 3, kind: input, shape index: {}]   ;;  %s1275_s4 = inlined_call_operand.vmem [shape: f32[1,128], index: 4, kind: input, shape index: {}]   ;;  %s1276_s5 = inlined_call_operand.vmem [shape: f32[1,128], index: 5, kind: input, shape index: {}]   ;;  %s1277_s6 = inlined_call_operand.hbm [shape: f32[16,128], index: 6, kind: output, shape index: {}]  }
   0x1   :  { %12 = vsyncpa [#allocation6], 0 }
   0x2   :  { %13 = vsyncpa [#allocation4], 0  ;;  %s1164_s21 = smov [#allocation5]   ;;  %s1070_s25 = scalar_lea.hbm %s1272_s1, 8192 }
   0x3   :  { %s31_s22 = sshll.u32 %s1164_s21, 4  ;;  %p1071_p0 = scmp.ne.s32.totalorder %s1272_s1, %s1070_s25  ;;  %s32_s22 = int_to_ptr.vmem [resolvable:$true] %s31_s22 }
   0x4   :  { %p1074_p1 = scmp.lt.u32.totalorder %s1070_s25, %s1272_s1 }
   0x6   :  { %p1076_p2 = pnand %p1074_p1, %p1071_p0 }
   0x8   :  { %1079 = shalt.err (!%p1076_p2)
}
   0x9   :  { %s1080_s30 = scalar_lea.vmem %s32_s22, 8192  ;;  %p1085_p4 = scmp.lt.s32.totalorder %s32_s22, %s32_s22 }
   0xa   :  { %p1081_p3 = scmp.ne.s32.totalorder %s32_s22, %s1080_s30  ;;  %p1086_p5 = scmp.lt.s32.totalorder %s1080_s30, %s1080_s30 }
   0xc   :  { %p1087_p6 = por %p1086_p5, %p1085_p4 }
   0xe   :  { %p1088_p7 = pnand %p1087_p6, %p1081_p3 }
  0x10   :  { %1091 = shalt.err (!%p1088_p7)
}
  0x11   :  { %s1165_s7 = smov 64   ;;  %s1166_s8 = smov 4  }
  0x12   :  { %37 = dma.hbm_to_vmem [thread:$0]  %s1272_s1, 8192, %s32_s22, [#allocation6], %s1165_s7, %s1165_s7, %s1166_s8  }
  0x13   :  { %s1167_s11 = smov [#allocation2]   ;;  %s1092_s15 = scalar_lea.hbm %s1271_s0, 2048 }
  0x14   :  { %s19_s12 = sshll.u32 %s1167_s11, 4  ;;  %p1093_p8 = scmp.ne.s32.totalorder %s1271_s0, %s1092_s15  ;;  %s20_s12 = int_to_ptr.vmem [resolvable:$true] %s19_s12 }
  0x15   :  { %p1096_p9 = scmp.lt.u32.totalorder %s1092_s15, %s1271_s0 }
  0x17   :  { %p1098_p10 = pnand %p1096_p9, %p1093_p8 }
  0x19   :  { %1101 = shalt.err (!%p1098_p10)
}
  0x1a   :  { %s1102_s20 = scalar_lea.vmem %s20_s12, 2048  ;;  %p1107_p12 = scmp.lt.s32.totalorder %s20_s12, %s20_s12 }
  0x1b   :  { %p1103_p11 = scmp.ne.s32.totalorder %s20_s12, %s1102_s20  ;;  %p1108_p13 = scmp.lt.s32.totalorder %s1102_s20, %s1102_s20 }
  0x1d   :  { %p1109_p0 = por %p1108_p13, %p1107_p12 }
  0x1f   :  { %p1110_p1 = pnand %p1109_p0, %p1103_p11 }
  0x21   :  { %1113 = shalt.err (!%p1110_p1)
}
  0x22   :  { %s1168_s1 = smov 1024   ;;  %s1169_s23 = smov [#allocation7]  }
  0x23   :  { %25 = dma.hbm_to_vmem [thread:$0]  %s1271_s0, 2048, %s20_s12, [#allocation3], %s1168_s1, %s1168_s1, %s1165_s7  }
  0x24   :  { %s45_s24 = sshll.u32 %s1169_s23, 4  ;;  %s1114_s27 = scalar_lea.hbm %s1274_s3, 256  ;;  %s46_s24 = int_to_ptr.vmem [resolvable:$true] %s45_s24 }
  0x25   :  { %p1115_p2 = scmp.ne.s32.totalorder %s1274_s3, %s1114_s27  ;;  %p1118_p3 = scmp.lt.u32.totalorder %s1114_s27, %s1274_s3 }
  0x27   :  { %p1120_p4 = pnand %p1118_p3, %p1115_p2 }
  0x29   :  { %1123 = shalt.err (!%p1120_p4)
}
  0x2a   :  { %s1124_s9 = scalar_lea.vmem %s46_s24, 256  ;;  %p1129_p6 = scmp.lt.s32.totalorder %s46_s24, %s46_s24 }
  0x2b   :  { %p1125_p5 = scmp.ne.s32.totalorder %s46_s24, %s1124_s9  ;;  %p1130_p7 = scmp.lt.s32.totalorder %s1124_s9, %s1124_s9 }
  0x2d   :  { %p1131_p8 = por %p1130_p7, %p1129_p6 }
  0x2f   :  { %p1132_p9 = pnand %p1131_p8, %p1125_p5 }
  0x31   :  { %1135 = shalt.err (!%p1132_p9)
}
  0x32   :  { %s1170_s0 = smov 128   ;;  %s1171_s7 = smov 8  }
  0x33   :  { %51 = dma.hbm_to_vmem [thread:$0]  %s1274_s3, 256, %s46_s24, [#allocation6], %s1170_s0, %s1170_s0, %s1171_s7  }
  0x34   :  { %1158 = dma.done.wait [#allocation3], 2048  }
  0x35   :  { %1159 = vsyncadd [#allocation3], 4294965248 }
  0x36   :  { %1160 = dma.done.wait [#allocation6], 8448  }
  0x37   :  { %1161 = vsyncadd [#allocation6], 4294958848  ;;  %v1002_v0 = vld [vmem:[#allocation5 + $0x40] sm:$0xff]   ;;  %v1006_v4 = vld [vmem:[#allocation5 + $0x48] sm:$0xff]   ;;  %s1172_s16 = smov [#allocation8]  }
  0x38   :  { %v1003_v1 = vld [vmem:[#allocation5 + $0xc0] sm:$0xff]   ;;  %905 = vmatprep.subr.bf16.mxu0 %v1002_v0  ;;  %v1007_v5 = vld [vmem:[#allocation5 + $0xc8] sm:$0xff]   ;;  %v1010_v8 = vld [vmem:[#allocation5 + $0x50] sm:$0xff]   ;;  %s825_s17 = sshll.u32 %s1172_s16, 4  ;;  %s826_s17 = int_to_ptr.vmem [resolvable:$true] %s825_s17 }
  0x39   :  { %v1004_v2 = vld [vmem:[#allocation5] sm:$0xff]   ;;  %927 = vmatprep.subr.bf16.mxu1 %v1003_v1  ;;  %v1008_v6 = vld [vmem:[#allocation5 + $0x8] sm:$0xff]   ;;  %v1011_v9 = vld [vmem:[#allocation5 + $0xd0] sm:$0xff]   ;;  %s1136_s18 = scalar_lea.vmem %s826_s17, 256  ;;  %p1141_p11 = scmp.lt.s32.totalorder %s826_s17, %s826_s17 }
  0x3a   :  { %v1005_v3 = vld [vmem:[#allocation5 + $0x80] sm:$0xff]   ;;  %906 = vmatpush3.bf16.msra.mxu0 %v1004_v2  ;;  %v1009_v7 = vld [vmem:[#allocation5 + $0x88] sm:$0xff]   ;;  %v1012_v10 = vld [vmem:[#allocation5 + $0x10] sm:$0xff]   ;;  %p1137_p10 = scmp.ne.s32.totalorder %s826_s17, %s1136_s18  ;;  %p1142_p12 = scmp.lt.s32.totalorder %s1136_s18, %s1136_s18 }
  0x3b   :  { %928 = vmatpush3.bf16.msra.mxu1 %v1005_v3  ;;  %907 = vmatprep.subr.bf16.mxu0 %v1006_v4  ;;  %v1013_v11 = vld [vmem:[#allocation5 + $0x90] sm:$0xff]   ;;  %v1014_v12 = vld [vmem:[#allocation5 + $0x58] sm:$0xff]   ;;  %v1018_v16 = vld [vmem:[#allocation5 + $0x60] sm:$0xff]  }
  0x3c   :  { %929 = vmatprep.subr.bf16.mxu1 %v1007_v5  ;;  %v1015_v13 = vld [vmem:[#allocation5 + $0xd8] sm:$0xff]   ;;  %v1019_v17 = vld [vmem:[#allocation5 + $0xe0] sm:$0xff]   ;;  %v1022_v20 = vld [vmem:[#allocation5 + $0x68] sm:$0xff]   ;;  %p1143_p13 = por %p1142_p12, %p1141_p11 }
  0x3d   :  { %v1016_v14 = vld [vmem:[#allocation5 + $0x18] sm:$0xff]   ;;  %v1020_v18 = vld [vmem:[#allocation5 + $0x20] sm:$0xff]   ;;  %v1023_v21 = vld [vmem:[#allocation5 + $0xe8] sm:$0xff]  }
  0x3e   :  { %908 = vmatpush3.bf16.msra.mxu0 %v1008_v6  ;;  %v1017_v15 = vld [vmem:[#allocation5 + $0x98] sm:$0xff]   ;;  %v1021_v19 = vld [vmem:[#allocation5 + $0xa0] sm:$0xff]   ;;  %v1024_v22 = vld [vmem:[#allocation5 + $0x28] sm:$0xff]   ;;  %p1144_p0 = pnand %p1143_p13, %p1137_p10 }
  0x3f   :  { %930 = vmatpush3.bf16.msra.mxu1 %v1009_v7  ;;  %909 = vmatprep.subr.bf16.mxu0 %v1010_v8  ;;  %v1025_v23 = vld [vmem:[#allocation5 + $0xa8] sm:$0xff]   ;;  %v1026_v24 = vld [vmem:[#allocation5 + $0x70] sm:$0xff]   ;;  %v1030_v28 = vld [vmem:[#allocation5 + $0x78] sm:$0xff]  }
  0x40   :  { %931 = vmatprep.subr.bf16.mxu1 %v1011_v9  ;;  %v1027_v25 = vld [vmem:[#allocation5 + $0xf0] sm:$0xff]   ;;  %v1031_v29 = vld [vmem:[#allocation5 + $0xf8] sm:$0xff]   ;;  %v67_v32 = vld [vmem:[#allocation2 + $0x8] sm:$0xff] }
  0x41   :  { %v1028_v26 = vld [vmem:[#allocation5 + $0x30] sm:$0xff]   ;;  %v1032_v30 = vld [vmem:[#allocation5 + $0x38] sm:$0xff]   ;;  %v75_v33 = vld [vmem:[#allocation2 + $0x48] sm:$0xff] }
  0x42   :  { %910 = vmatpush3.bf16.msra.mxu0 %v1012_v10  ;;  %v1029_v27 = vld [vmem:[#allocation5 + $0xb0] sm:$0xff]   ;;  %v1033_v31 = vld [vmem:[#allocation5 + $0xb8] sm:$0xff]   ;;  %v83_v35 = vpack.c.bf16 %v75_v33, %v67_v32  ;;  %v66_v37 = vld [vmem:[#allocation2] sm:$0xff] }
  0x43   :  { %932 = vmatpush3.bf16.msra.mxu1 %v1013_v11  ;;  %911 = vmatprep.subr.bf16.mxu0 %v1014_v12  ;;  %v69_v34 = vld [vmem:[#allocation2 + $0x18] sm:$0xff]  ;;  %v74_v38 = vld [vmem:[#allocation2 + $0x40] sm:$0xff]  ;;  %v68_v41 = vld [vmem:[#allocation2 + $0x10] sm:$0xff] }
  0x44   :  { %933 = vmatprep.subr.bf16.mxu1 %v1015_v13  ;;  %v77_v36 = vld [vmem:[#allocation2 + $0x58] sm:$0xff]  ;;  %v82_v40 = vpack.c.bf16 %v74_v38, %v66_v37  ;;  %v76_v42 = vld [vmem:[#allocation2 + $0x50] sm:$0xff]  ;;  %641 = vmatprep.mubr.bf16.mxu0 %v83_v35  ;;  %v1034_v44 = vld [vmem:[#allocation5 + $0x140] sm:$0xff]  }
  0x45   :  { %v85_v39 = vpack.c.bf16 %v77_v36, %v69_v34  ;;  %v84_v43 = vpack.c.bf16 %v76_v42, %v68_v41  ;;  %v1035_v45 = vld [vmem:[#allocation5 + $0x1c0] sm:$0xff]   ;;  %v1038_v48 = vld [vmem:[#allocation5 + $0x148] sm:$0xff]   ;;  %v1042_v52 = vld [vmem:[#allocation5 + $0x150] sm:$0xff]  }
  0x46   :  { %912 = vmatpush3.bf16.msra.mxu0 %v1016_v14  ;;  %v1036_v46 = vld [vmem:[#allocation5 + $0x100] sm:$0xff]   ;;  %v1039_v49 = vld [vmem:[#allocation5 + $0x1c8] sm:$0xff]   ;;  %v1043_v53 = vld [vmem:[#allocation5 + $0x1d0] sm:$0xff]  }
  0x47   :  { %934 = vmatpush3.bf16.msra.mxu1 %v1017_v15  ;;  %913 = vmatprep.subr.bf16.mxu0 %v1018_v16  ;;  %v1037_v47 = vld [vmem:[#allocation5 + $0x180] sm:$0xff]   ;;  %v1040_v50 = vld [vmem:[#allocation5 + $0x108] sm:$0xff]   ;;  %v1044_v54 = vld [vmem:[#allocation5 + $0x110] sm:$0xff]  }
  0x48   :  { %935 = vmatprep.subr.bf16.mxu1 %v1019_v17  ;;  %682 = vmatprep.mubr.bf16.mxu1 %v85_v39  ;;  %v1041_v51 = vld [vmem:[#allocation5 + $0x188] sm:$0xff]   ;;  %v1045_v55 = vld [vmem:[#allocation5 + $0x190] sm:$0xff]   ;;  %v1046_v56 = vld [vmem:[#allocation5 + $0x158] sm:$0xff]  }
  0x49   :  { %v1047_v57 = vld [vmem:[#allocation5 + $0x1d8] sm:$0xff]   ;;  %v1050_v60 = vld [vmem:[#allocation5 + $0x160] sm:$0xff]   ;;  %v1054_v0 = vld [vmem:[#allocation5 + $0x168] sm:$0xff]  }
  0x4a   :  { %914 = vmatpush3.bf16.msra.mxu0 %v1020_v18  ;;  %v1048_v58 = vld [vmem:[#allocation5 + $0x118] sm:$0xff]   ;;  %v1051_v61 = vld [vmem:[#allocation5 + $0x1e0] sm:$0xff]   ;;  %v1055_v1 = vld [vmem:[#allocation5 + $0x1e8] sm:$0xff]  }
  0x4b   :  { %936 = vmatpush3.bf16.msra.mxu1 %v1021_v19  ;;  %915 = vmatprep.subr.bf16.mxu0 %v1022_v20  ;;  %v1049_v59 = vld [vmem:[#allocation5 + $0x198] sm:$0xff]   ;;  %v1052_v62 = vld [vmem:[#allocation5 + $0x120] sm:$0xff]   ;;  %v1056_v2 = vld [vmem:[#allocation5 + $0x128] sm:$0xff]  }
  0x4c   :  { %937 = vmatprep.subr.bf16.mxu1 %v1023_v21  ;;  %v1053_v63 = vld [vmem:[#allocation5 + $0x1a0] sm:$0xff]   ;;  %v1057_v3 = vld [vmem:[#allocation5 + $0x1a8] sm:$0xff]   ;;  %v1058_v4 = vld [vmem:[#allocation5 + $0x170] sm:$0xff]  }
  0x4d   :  { %v1059_v5 = vld [vmem:[#allocation5 + $0x1f0] sm:$0xff]   ;;  %v1062_v8 = vld [vmem:[#allocation5 + $0x178] sm:$0xff]   ;;  %v71_v12 = vld [vmem:[#allocation2 + $0x28] sm:$0xff] }
  0x4e   :  { %916 = vmatpush3.bf16.msra.mxu0 %v1024_v22  ;;  %v1060_v6 = vld [vmem:[#allocation5 + $0x130] sm:$0xff]   ;;  %v1063_v9 = vld [vmem:[#allocation5 + $0x1f8] sm:$0xff]   ;;  %v79_v13 = vld [vmem:[#allocation2 + $0x68] sm:$0xff] }
  0x4f   :  { %938 = vmatpush3.bf16.msra.mxu1 %v1025_v23  ;;  %917 = vmatprep.subr.bf16.mxu0 %v1026_v24  ;;  %v1061_v7 = vld [vmem:[#allocation5 + $0x1b0] sm:$0xff]   ;;  %v1064_v10 = vld [vmem:[#allocation5 + $0x138] sm:$0xff]   ;;  %v87_v16 = vpack.c.bf16 %v79_v13, %v71_v12  ;;  %v70_v18 = vld [vmem:[#allocation2 + $0x20] sm:$0xff] }
  0x50   :  { %939 = vmatprep.subr.bf16.mxu1 %v1027_v25  ;;  %v1065_v11 = vld [vmem:[#allocation5 + $0x1b8] sm:$0xff]   ;;  %v78_v19 = vld [vmem:[#allocation2 + $0x60] sm:$0xff]  ;;  %v72_v20 = vld [vmem:[#allocation2 + $0x30] sm:$0xff] }
  0x51   :  { %v73_v14 = vld [vmem:[#allocation2 + $0x38] sm:$0xff]  ;;  %v86_v21 = vpack.c.bf16 %v78_v19, %v70_v18  ;;  %v80_v22 = vld [vmem:[#allocation2 + $0x70] sm:$0xff]  ;;  %v903_v12 = vld [vmem:[%s1275_s4] ss:$0 sm:$0xff] }
  0x52   :  { %918 = vmatpush3.bf16.msra.mxu0 %v1028_v26  ;;  %v81_v15 = vld [vmem:[#allocation2 + $0x78] sm:$0xff]  ;;  %v88_v23 = vpack.c.bf16 %v80_v22, %v72_v20  ;;  %v838_v26 = vld [vmem:[%s1273_s2] ss:$0 sm:$0xff] }
  0x53   :  { %940 = vmatpush3.bf16.msra.mxu1 %v1029_v27  ;;  %919 = vmatprep.subr.bf16.mxu0 %v1030_v28  ;;  %v89_v17 = vpack.c.bf16 %v81_v15, %v73_v14  ;;  %v904_v14 = vld [vmem:[%s1276_s5] ss:$0 sm:$0xff] }
  0x54   :  { %941 = vmatprep.subr.bf16.mxu1 %v1031_v29 }
  0x56   :  { %920 = vmatpush3.bf16.msra.mxu0 %v1032_v30 }
  0x57   :  { %942 = vmatpush3.bf16.msra.mxu1 %v1033_v31  ;;  %949 = vmatprep.subr.bf16.mxu0 %v1034_v44 }
  0x58   :  { %971 = vmatprep.subr.bf16.mxu1 %v1035_v45 }
  0x59   :  { %642 = vmatmul.mubr.bf16.vlgmr.msra.gmra.mrb[0].mxu0 %v82_v40 }
  0x5a   :  { %683 = vmatmul.mubr.bf16.vlgmr.msra.gmra.mrb[0].mxu1 %v84_v43  ;;  %950 = vmatpush3.bf16.msra.mxu0 %v1036_v46 }
  0x5b   :  { %972 = vmatpush3.bf16.msra.mxu1 %v1037_v47  ;;  %951 = vmatprep.subr.bf16.mxu0 %v1038_v48 }
  0x5c   :  { %973 = vmatprep.subr.bf16.mxu1 %v1039_v49  ;;  %723 = vmatprep.mubr.bf16.mxu0 %v87_v16 }
  0x5d   :  { %764 = vmatprep.mubr.bf16.mxu1 %v89_v17 }
  0x5e   :  { %952 = vmatpush3.bf16.msra.mxu0 %v1040_v50 }
  0x5f   :  { %974 = vmatpush3.bf16.msra.mxu1 %v1041_v51  ;;  %953 = vmatprep.subr.bf16.mxu0 %v1042_v52 }
  0x60   :  { %975 = vmatprep.subr.bf16.mxu1 %v1043_v53 }
  0x62   :  { %954 = vmatpush3.bf16.msra.mxu0 %v1044_v54  ;;  %v773_v54 = vld [vmem:[#allocation7] sm:$0xff] }
  0x63   :  { %976 = vmatpush3.bf16.msra.mxu1 %v1045_v55  ;;  %955 = vmatprep.subr.bf16.mxu0 %v1046_v56 }
  0x64   :  { %977 = vmatprep.subr.bf16.mxu1 %v1047_v57 }
  0x66   :  { %956 = vmatpush3.bf16.msra.mxu0 %v1048_v58 }
  0x67   :  { %978 = vmatpush3.bf16.msra.mxu1 %v1049_v59  ;;  %957 = vmatprep.subr.bf16.mxu0 %v1050_v60  ;;  %v774_v59 = vld [vmem:[#allocation7 + $0x8] sm:$0xff] }
  0x68   :  { %979 = vmatprep.subr.bf16.mxu1 %v1051_v61 }
  0x6a   :  { %958 = vmatpush3.bf16.msra.mxu0 %v1052_v62 }
  0x6b   :  { %980 = vmatpush3.bf16.msra.mxu1 %v1053_v63  ;;  %959 = vmatprep.subr.bf16.mxu0 %v1054_v0 }
  0x6c   :  { %981 = vmatprep.subr.bf16.mxu1 %v1055_v1 }
  0x6e   :  { %960 = vmatpush3.bf16.msra.mxu0 %v1056_v2 }
  0x6f   :  { %982 = vmatpush3.bf16.msra.mxu1 %v1057_v3  ;;  %961 = vmatprep.subr.bf16.mxu0 %v1058_v4 }
  0x70   :  { %983 = vmatprep.subr.bf16.mxu1 %v1059_v5 }
  0x72   :  { %962 = vmatpush3.bf16.msra.mxu0 %v1060_v6 }
  0x73   :  { %984 = vmatpush3.bf16.msra.mxu1 %v1061_v7  ;;  %963 = vmatprep.subr.bf16.mxu0 %v1062_v8 }
  0x74   :  { %985 = vmatprep.subr.bf16.mxu1 %v1063_v9 }
  0x76   :  { %964 = vmatpush3.bf16.msra.mxu0 %v1064_v10 }
  0x77   :  { %986 = vmatpush3.bf16.msra.mxu1 %v1065_v11 }
  0x79   :  { %724 = vmatmul.mubr.bf16.vlgmr.msra.gmra.mrb[4].mxu0 %v86_v21 }
  0x7a   :  { %765 = vmatmul.mubr.bf16.vlgmr.msra.gmra.mrb[4].mxu1 %v88_v23 }
 0x12c   :  { %v921_v24 = vpop.f32.mrb[0].mxu0 }
 0x12d   :  { %v943_v25 = vpop.f32.mrb[0].mxu1  ;;  %v922_v27 = vpop.f32.mrb[1].mxu0 }
 0x12e   :  { %v923_v28 = vadd.f32 %v922_v27, %v921_v24  ;;  %v944_v29 = vpop.f32.mrb[1].mxu1  ;;  %v924_v30 = vpop.f32.mrb[2].mxu0 }
 0x12f   :  { %v945_v31 = vadd.f32 %v944_v29, %v943_v25  ;;  %v946_v32 = vpop.f32.mrb[2].mxu1  ;;  %v925_v33 = vpop.f32.mrb[3].mxu0 }
 0x130   :  { %v644_v34 = vadd.f32 %v923_v28, %v838_v26  ;;  %v926_v35 = vadd.f32 %v925_v33, %v924_v30  ;;  %v947_v36 = vpop.f32.mrb[3].mxu1 }
 0x131   :  { %v948_v37 = vadd.f32 %v947_v36, %v946_v32 }
 0x132   :  { %v685_v38 = vadd.f32 %v945_v31, %v644_v34  ;;  %v647_v39 = vadd.f32 %v926_v35, %v838_v26 }
 0x134   :  { %v688_v40 = vadd.f32 %v948_v37, %v647_v39 }
 0x14c   :  { %v965_v41 = vpop.f32.mrb[4].mxu0 }
 0x14d   :  { %v987_v42 = vpop.f32.mrb[4].mxu1  ;;  %v966_v43 = vpop.f32.mrb[5].mxu0 }
 0x14e   :  { %v967_v44 = vadd.f32 %v966_v43, %v965_v41  ;;  %v988_v45 = vpop.f32.mrb[5].mxu1  ;;  %v968_v46 = vpop.f32.mrb[6].mxu0 }
 0x14f   :  { %v989_v47 = vadd.f32 %v988_v45, %v987_v42  ;;  %v990_v48 = vpop.f32.mrb[6].mxu1  ;;  %v969_v49 = vpop.f32.mrb[7].mxu0 }
 0x150   :  { %v726_v50 = vadd.f32 %v967_v44, %v685_v38  ;;  %v970_v51 = vadd.f32 %v969_v49, %v968_v46  ;;  %v991_v52 = vpop.f32.mrb[7].mxu1 }
 0x151   :  { %v992_v53 = vadd.f32 %v991_v52, %v990_v48 }
 0x152   :  { %v767_v55 = vadd.f32 %v989_v47, %v726_v50  ;;  %v729_v56 = vadd.f32 %v970_v51, %v688_v40 }
 0x154   :  { %v770_v57 = vadd.f32 %v992_v53, %v729_v56  ;;  %v775_v58 = vadd.f32 %v773_v54, %v767_v55 }
 0x156   :  { %777 = vadd.xlane.f32.xlu0 %v775_v58  ;;  %v776_v60 = vadd.f32 %v774_v59, %v770_v57 }
 0x15a   :  { %779 = vadd.xlane.f32.xlu0 %v776_v60 }
 0x1e3   :  { %v778_v61 = vpop.xlane.xlu0 %777 }
 0x1e4   :  { %v782_v62 = vmul.f32 0.0078125, %v778_v61 }
 0x1e6   :  { %v784_v63 = vsub.f32 %v775_v58, %v782_v62 }
 0x1e7   :  { %v780_v0 = vpop.xlane.xlu0 %779 }
 0x1e8   :  { %v783_v1 = vmul.f32 0.0078125, %v780_v0  ;;  %v786_v2 = vmul.f32 %v784_v63, %v784_v63 }
 0x1ea   :  { %v785_v3 = vsub.f32 %v776_v60, %v783_v1  ;;  %788 = vadd.xlane.f32.xlu1 %v786_v2 }
 0x1ec   :  { %v787_v4 = vmul.f32 %v785_v3, %v785_v3 }
 0x1ee   :  { %790 = vadd.xlane.f32.xlu1 %v787_v4 }
 0x277   :  { %v789_v5 = vpop.xlane.xlu1 %788 }
 0x278   :  { %v792_v6 = vmul.f32 0.0078125, %v789_v5 }
 0x27a   :  { %v794_v7 = vadd.f32 1e-12, %v792_v6 }
 0x27b   :  { %v791_v8 = vpop.xlane.xlu1 %790 }
 0x27c   :  { %1066 = vrsqrt.f32 %v794_v7  ;;  %v793_v9 = vmul.f32 0.0078125, %v791_v8 }
 0x27e   :  { %v795_v10 = vadd.f32 1e-12, %v793_v9 }
 0x280   :  { %1068 = vrsqrt.f32 %v795_v10 }
 0x286   :  { %v1067_v11 = vpop.eup %1066 }
 0x287   :  { %v798_v13 = vmul.f32 %v1067_v11, %v784_v63 }
 0x289   :  { %v807_v15 = vmul.f32 %v903_v12, %v798_v13 }
 0x28a   :  { %v1069_v16 = vpop.eup %1068 }
 0x28b   :  { %v799_v17 = vmul.f32 %v1069_v16, %v785_v3  ;;  %v816_v18 = vadd.f32 %v904_v14, %v807_v15 }
 0x28d   :  { %v808_v19 = vmul.f32 %v903_v12, %v799_v17  ;;  %818 = vst [vmem:[#allocation8] sm:$0xff] %v816_v18 }
 0x28f   :  { %v817_v20 = vadd.f32 %v904_v14, %v808_v19 }
 0x291   :  { %819 = vst [vmem:[#allocation8 + $0x8] sm:$0xff] %v817_v20 }
 0x292   :  { %1147 = shalt.err (!%p1144_p0)
}
 0x293   :  { %s1148_s19 = scalar_lea.hbm %s1277_s6, 256 }
 0x294   :  { %p1149_p1 = scmp.ne.s32.totalorder %s1277_s6, %s1148_s19  ;;  %p1152_p2 = scmp.lt.u32.totalorder %s1148_s19, %s1277_s6 }
 0x296   :  { %p1154_p3 = pnand %p1152_p2, %p1149_p1 }
 0x298   :  { %1157 = shalt.err (!%p1154_p3)
}
 0x299   :  { %831 = dma.vmem_to_hbm [thread:$0]  %s826_s17, 256, %s1277_s6, [#allocation4], %s1170_s0, %s1170_s0, %s1171_s7  }
 0x29a   :  { %1162 = dma.done.wait [#allocation4], 256  }
 0x29b   :  { %1163 = vsyncadd [#allocation4], 4294967040 }
 0x29c   :  { %835 = vsyncpa [#allocation3], 1 }
 0x29d   :  { %836 = vsyncpa [#allocation6], 1 }
 0x29e   :  { %837 = vsyncpa [#allocation4], 1 }

</bundles_post_ra>
